<compile_context>
chip_gen: v7x
topology: tpu7x:2x2x1
jax: 0.10.0
libtpu: 0.0.40
codegen_flags: <defaults>
</compile_context>

<pallas_src>
import functools

import jax
import jax.numpy as jnp
from jax.experimental import pallas as pl
from jax.experimental.pallas import tpu as pltpu


_PHASES = ((0, 0), (0, 1), (1, 0), (1, 1))   # (py, px) parity; packed lane block = 2*py+px


def _tap_index(parity, k):
    # Which of the two original-resolution taps (0/1) does 3x3 kernel index k (0..2)
    # read, for output parity `parity` (0/1)?
    return (parity + k - 1) // 2 + 1 - parity


def _fold_weights(w, cq):
    """OIHW (Cout, Cin, 3, 3) -> (4 phases, 4*Cin, Cq) bf16 folded weights.

    Contraction-row layout matches the kernel lhs: row = di*2*Cin + dj*Cin + ci,
    where di / dj are the row / column tap indices.
    """
    cout, cin = w.shape[0], w.shape[1]
    wf = jnp.zeros((4, 4 * cin, cq), jnp.float32)
    for p_idx, (py, px) in enumerate(_PHASES):
        for ki in range(3):
            di = _tap_index(py, ki)
            for kj in range(3):
                dj = _tap_index(px, kj)
                blk = jnp.transpose(w[:, :, ki, kj]).astype(jnp.float32)   # (Cin, Cout)
                row0 = di * 2 * cin + dj * cin
                wf = wf.at[p_idx, row0:row0 + cin, :cout].add(blk)
    return wf.astype(jnp.bfloat16)


# --------------------------- pass 1: conv + BN partial stats ---------------------------

def _conv_stats_kernel(tiles_ref, wf_ref, conv_ref, stats_ref, *, th, width, cq):
    # tiles_ref: (2, 1, 1, (th+2)*W, 2*Cin) bf16  column-pair-folded rows (+2-row halo)
    # wf_ref   : (4, 4*Cin, Cq)             bf16  folded weights [phase, K, Cq]
    # conv_ref : (1, 1, th, W, 4*Cq)        bf16  phase-packed conv activations
    # stats_ref: (1, 1, 2, 4*Cq)            f32   per-tile [sum, sum_sq] partials
    accs = []
    for p_idx, (py, px) in enumerate(_PHASES):
        # Row taps as shifted contiguous slabs of the halo'd tile; fold them into K.
        top = tiles_ref[px, 0, 0, pl.ds((py + 0) * width, th * width), :]
        bot = tiles_ref[px, 0, 0, pl.ds((py + 1) * width, th * width), :]
        lhs = jnp.concatenate([top, bot], axis=1)                 # (th*W, 4*Cin) bf16
        accs.append(jnp.dot(lhs, wf_ref[p_idx],
                            preferred_element_type=jnp.float32))  # (th*W, Cq) f32
    acc = jnp.concatenate(accs, axis=-1)                          # (th*W, 4*Cq) f32
    s1 = jnp.sum(acc, axis=0, keepdims=True)
    s2 = jnp.sum(acc * acc, axis=0, keepdims=True)
    stats_ref[0, 0, :, :] = jnp.concatenate([s1, s2], axis=0)
    conv_ref[0, 0, :, :, :] = acc.reshape(th, width, 4 * cq).astype(conv_ref.dtype)


# --------------------------- pass 2: affine (BN) + ReLU + un-phase-ready write ---------

def _bn_relu_kernel(conv_ref, scale_ref, shift_ref, o_ref, *, cq, cout):
    # conv_ref : (1, 1, th, W, 4*Cq) bf16  phase-packed activations
    # scale/shift: (1, 1, 4*Cq)      f32   precomputed BN scale / shift (tiled x4 phases)
    # o_ref    : (1, 1, th, 2, W, 2*Cout) f32  interleave-ready output block
    y = conv_ref[0, 0, :, :, :].astype(jnp.float32) * scale_ref[...] + shift_ref[...]
    y = jnp.maximum(y, 0.0)
    for py in (0, 1):
        if cq == cout:
            part = y[:, :, (2 * py) * cq:(2 * py + 2) * cq]
        else:
            part = jnp.concatenate(
                [y[:, :, (2 * py) * cq:(2 * py) * cq + cout],
                 y[:, :, (2 * py + 1) * cq:(2 * py + 1) * cq + cout]], axis=-1)
        o_ref[0, 0, :, py, :, :] = part


# --------------------------------------- wrapper ---------------------------------------

def _pick_row_tile(h, w, n, cin, cq, max_tile_rows, vmem_budget_bytes):
    """Largest divisor of H whose per-step VMEM working set fits the budget."""
    cands = [t for t in range(1, h + 1) if h % t == 0]

    def est_bytes(t):
        rows = t * w
        pass1 = (2 * 2 * (t + 2) * w * 2 * cin * 2    # input tile blocks (bf16, x2 buffers)
                 + 2 * rows * 4 * cq * 2              # packed conv out block (bf16, x2)
                 + rows * 4 * cq * 4                  # f32 packed accumulator
                 + 2 * rows * 4 * cin * 2             # lhs temporaries (bf16)
                 + 2 * 4 * 4 * cin * cq * 2)          # folded weights (bf16, x2)
        pass2 = (2 * rows * 4 * cq * 2                # conv block in (bf16, x2)
                 + rows * 4 * cq * 4                  # f32 activations
                 + 2 * rows * 4 * cq * 4)             # output block (f32, x2)
        return max(pass1, pass2)

    ok = [t for t in cands
          if est_bytes(t) <= vmem_budget_bytes
          and (max_tile_rows is None or t * w <= max_tile_rows)]
    if not ok:
        ok = [1]
    # Megacore balance: prefer a grid with at least 2 steps (both v7x TensorCores busy).
    multi = [t for t in ok if n * (h // t) >= 2]
    if multi:
        ok = multi
    return max(ok)


def upconvolution_block(x_nchw, w, b, gamma, beta, eps=1e-5,
                        max_tile_rows=None, vmem_budget_bytes=16 * 1024 * 1024):
    """Forward pass of UpConvolutionBlock (training-mode BatchNorm).

    x_nchw : (N, Cin, H, W) f32 ; w : (Cout, Cin, 3, 3) OIHW ; b : (Cout,)
    gamma, beta : (Cout,)       ; returns (N, Cout, 2H, 2W) f32.
    The conv bias `b` is exactly cancelled by training-mode BatchNorm mean
    subtraction, so it is not used by the kernels.
    """
    del b  # absorbed by BatchNorm (training mode only)

    n, cin, h, wd = x_nchw.shape
    cout = w.shape[0]
    cq = ((cout + 31) // 32) * 32            # per-phase lane block; 4*cq % 128 == 0
    th = _pick_row_tile(h, wd, n, cin, cq, max_tile_rows, vmem_budget_bytes)
    num_rt = h // th
    count = float(n * 4 * h * wd)            # BN population: N * 2H * 2W

    vmem_limit = 48 * 1024 * 1024

    # ---- input glue (bf16): NHWC, pad, fold the two column taps into channels --------
    x_nhwc = jnp.transpose(x_nchw, (0, 2, 3, 1)).astype(jnp.float32)      # (N,H,W,Cin)
    xp = jnp.pad(x_nhwc, ((0, 0), (1, 1), (1, 1), (0, 0)))                # (N,H+2,W+2,Cin)
    ccat = jnp.stack(
        [jnp.concatenate([xp[:, :, px:px + wd, :],
                          xp[:, :, px + 1:px + 1 + wd, :]], axis=-1)
         for px in (0, 1)], axis=0).astype(jnp.bfloat16)                  # (2,N,H+2,W,2Cin)
    r_idx = jnp.arange(num_rt)[:, None] * th + jnp.arange(th + 2)[None, :]
    tiles = ccat[:, :, r_idx].reshape(2, n, num_rt, (th + 2) * wd, 2 * cin)

    wf = _fold_weights(w, cq)                                             # (4,4Cin,Cq) bf16

    # ---- pass 1: phase-packed conv + per-tile BN partial statistics -------------------
    conv_out, stats = pl.pallas_call(
        functools.partial(_conv_stats_kernel, th=th, width=wd, cq=cq),
        grid=(n, num_rt),
        in_specs=[
            pl.BlockSpec((2, 1, 1, (th + 2) * wd, 2 * cin),
                         lambda i, r: (0, i, r, 0, 0)),
            pl.BlockSpec((4, 4 * cin, cq), lambda i, r: (0, 0, 0)),
        ],
        out_specs=[
            pl.BlockSpec((1, 1, th, wd, 4 * cq), lambda i, r: (i, r, 0, 0, 0)),
            pl.BlockSpec((1, 1, 2, 4 * cq), lambda i, r: (i, r, 0, 0)),
        ],
        out_shape=[
            jax.ShapeDtypeStruct((n, num_rt, th, wd, 4 * cq), jnp.bfloat16),
            jax.ShapeDtypeStruct((n, num_rt, 2, 4 * cq), jnp.float32),
        ],
        compiler_params=pltpu.CompilerParams(
            dimension_semantics=("parallel", "parallel"),
            vmem_limit_bytes=vmem_limit),
    )(tiles, wf)

    # ---- combine per-tile partials, precompute BN scale / shift (tiny) ----------------
    s = jnp.sum(stats, axis=(0, 1)).reshape(2, 4, cq)
    s1 = jnp.sum(s[0], axis=0)                                            # (Cq,)
    s2 = jnp.sum(s[1], axis=0)
    mean = s1 / count
    var = jnp.maximum(s2 / count - mean * mean, 0.0)
    gamma_p = jnp.pad(gamma.astype(jnp.float32), (0, cq - cout), constant_values=1.0)
    beta_p = jnp.pad(beta.astype(jnp.float32), (0, cq - cout))
    scale = gamma_p * jax.lax.rsqrt(var + eps)
    shift = beta_p - mean * scale
    scale4 = jnp.tile(scale, 4).reshape(1, 1, 4 * cq)
    shift4 = jnp.tile(shift, 4).reshape(1, 1, 4 * cq)

    # ---- pass 2: FMA + ReLU, interleave-ready output blocks ---------------------------
    out6 = pl.pallas_call(
        functools.partial(_bn_relu_kernel, cq=cq, cout=cout),
        grid=(n, num_rt),
        in_specs=[
            pl.BlockSpec((1, 1, th, wd, 4 * cq), lambda i, r: (i, r, 0, 0, 0)),
            pl.BlockSpec((1, 1, 4 * cq), lambda i, r: (0, 0, 0)),
            pl.BlockSpec((1, 1, 4 * cq), lambda i, r: (0, 0, 0)),
        ],
        out_specs=pl.BlockSpec((1, 1, th, 2, wd, 2 * cout),
                               lambda i, r: (i, r, 0, 0, 0, 0)),
        out_shape=jax.ShapeDtypeStruct((n, num_rt, th, 2, wd, 2 * cout), jnp.float32),
        compiler_params=pltpu.CompilerParams(
            dimension_semantics=("parallel", "parallel"),
            vmem_limit_bytes=vmem_limit),
    )(conv_out, scale4, shift4)

    # ---- un-phase: pure reshapes (free) + one NHWC -> NCHW transpose -------------------
    out_nhwc = out6.reshape(n, h, 2, wd, 2, cout).reshape(n, 2 * h, 2 * wd, cout)
    # TODO(synk): writing NCHW directly would need strided/transposed in-kernel stores;
    # one XLA transpose of the exact-sized f32 output is kept instead.
    return jnp.transpose(out_nhwc, (0, 3, 1, 2))


def _reference(x_nchw, w, b, gamma, beta, eps=1e-5):
    """Plain-JAX reference (mirrors the PyTorch forward in train mode)."""
    up = jnp.repeat(jnp.repeat(x_nchw, 2, axis=2), 2, axis=3)
    conv = jax.lax.conv_general_dilated(
        up, w, window_strides=(1, 1), padding=((1, 1), (1, 1)),
        dimension_numbers=("NCHW", "OIHW", "NCHW"),
    ) + b[None, :, None, None]
    mean = conv.mean(axis=(0, 2, 3), keepdims=True)
    var = ((conv - mean) ** 2).mean(axis=(0, 2, 3), keepdims=True)
    y = (conv - mean) * jax.lax.rsqrt(var + eps)
    y = y * gamma[None, :, None, None] + beta[None, :, None, None]
    return jnp.maximum(y, 0.0)


if __name__ == "__main__":
    # Small, PyTorch-consistent shapes: batch=2, in_ch=4, out_ch=8, spatial=16.
    N, IN_CH, OUT_CH, H, W = 2, 4, 8, 16, 16

    key = jax.random.PRNGKey(0)
    kx, kw, kb = jax.random.split(key, 3)

    x = jax.random.normal(kx, (N, IN_CH, H, W), dtype=jnp.float32)

    # Deterministic parameter init (Conv2d-style uniform bounds; BN defaults).
    fan_in = IN_CH * 3 * 3
    bound = 1.0 / (fan_in ** 0.5)
    w = jax.random.uniform(kw, (OUT_CH, IN_CH, 3, 3), jnp.float32, -bound, bound)
    b = jax.random.uniform(kb, (OUT_CH,), jnp.float32, -bound, bound)
    gamma = jnp.ones((OUT_CH,), jnp.float32)   # BatchNorm2d weight init
    beta = jnp.zeros((OUT_CH,), jnp.float32)   # BatchNorm2d bias init

    # max_tile_rows=128 -> 2 row tiles per image, exercising the multi-tile path.
    out = upconvolution_block(x, w, b, gamma, beta, max_tile_rows=128)
    out = jax.block_until_ready(out)

    assert out.shape == (N, OUT_CH, 2 * H, 2 * W), out.shape

    ref = jax.block_until_ready(_reference(x, w, b, gamma, beta))
    max_err = float(jnp.max(jnp.abs(out - ref)))
    # Tolerance accounts for the deliberate bf16 MXU-operand + bf16 intermediate path
    # (f32 accumulation); a wrong kernel would be off by O(1).
    assert max_err < 4e-2, f"mismatch vs reference: {max_err}"

    print("KERNEL_OK")
</pallas_src>

<mosaic_0001>
module attributes {stable_mosaic.version = 11 : i64} {
  func.func @_conv_stats_kernel(%arg0: i32, %arg1: i32, %arg2: memref<2x1x1x160x8xbf16, #tpu.memory_space<vmem>>, %arg3: memref<4x16x32xbf16, #tpu.memory_space<vmem>>, %arg4: memref<1x1x8x16x128xbf16, #tpu.memory_space<vmem>>, %arg5: memref<1x1x2x128xf32, #tpu.memory_space<vmem>>) attributes {dimension_semantics = [#tpu.dimension_semantics<parallel>, #tpu.dimension_semantics<parallel>], iteration_bounds = array<i64: 2, 2>, scalar_prefetch = 0 : i64, scratch_operands = 0 : i64, tpu.core_type = #tpu.core_type<tc>, window_params = [{transform_indices = @transform_0, window_bounds = array<i64: 2, 1, 1, 160, 8>}, {pipeline_mode = #tpu.pipeline_mode<synchronous>, transform_indices = @transform_1, window_bounds = array<i64: 4, 16, 32>}, {transform_indices = @transform_2, window_bounds = array<i64: 1, 1, 8, 16, 128>}, {transform_indices = @transform_3, window_bounds = array<i64: 1, 1, 2, 128>}]} {
    %c0 = arith.constant 0 : index
    %c0_0 = arith.constant 0 : index
    %c0_1 = arith.constant 0 : index
    %c0_2 = arith.constant 0 : index
    %c0_3 = arith.constant 0 : index
    %0 = vector.load %arg2[%c0, %c0_0, %c0_1, %c0_2, %c0_3] : memref<2x1x1x160x8xbf16, #tpu.memory_space<vmem>>, vector<1x1x1x128x8xbf16>
    %1 = vector.shape_cast %0 : vector<1x1x1x128x8xbf16> to vector<128x8xbf16>
    %c0_4 = arith.constant 0 : index
    %c0_5 = arith.constant 0 : index
    %c0_6 = arith.constant 0 : index
    %c16 = arith.constant 16 : index
    %c0_7 = arith.constant 0 : index
    %2 = vector.load %arg2[%c0_4, %c0_5, %c0_6, %c16, %c0_7] : memref<2x1x1x160x8xbf16, #tpu.memory_space<vmem>>, vector<1x1x1x128x8xbf16>
    %3 = vector.shape_cast %2 : vector<1x1x1x128x8xbf16> to vector<128x8xbf16>
    %4 = tpu.concatenate %1, %3 in 1 : vector<128x8xbf16>, vector<128x8xbf16> -> vector<128x16xbf16>
    %c0_8 = arith.constant 0 : index
    %c0_9 = arith.constant 0 : index
    %c0_10 = arith.constant 0 : index
    %5 = vector.load %arg3[%c0_8, %c0_9, %c0_10] : memref<4x16x32xbf16, #tpu.memory_space<vmem>>, vector<1x16x32xbf16>
    %6 = vector.shape_cast %5 : vector<1x16x32xbf16> to vector<16x32xbf16>
    %cst = arith.constant dense<0.000000e+00> : vector<128x32xf32>
    %7 = tpu.matmul %4, %6, %cst {dimension_numbers = #tpu.dot_dimension_numbers<[1], [0], [0], [1], [0, 0, 1, 1], [], []>} : vector<128x16xbf16>, vector<16x32xbf16>, vector<128x32xf32> -> vector<128x32xf32>
    %c1 = arith.constant 1 : index
    %c0_11 = arith.constant 0 : index
    %c0_12 = arith.constant 0 : index
    %c0_13 = arith.constant 0 : index
    %c0_14 = arith.constant 0 : index
    %8 = vector.load %arg2[%c1, %c0_11, %c0_12, %c0_13, %c0_14] : memref<2x1x1x160x8xbf16, #tpu.memory_space<vmem>>, vector<1x1x1x128x8xbf16>
    %9 = vector.shape_cast %8 : vector<1x1x1x128x8xbf16> to vector<128x8xbf16>
    %c1_15 = arith.constant 1 : index
    %c0_16 = arith.constant 0 : index
    %c0_17 = arith.constant 0 : index
    %c16_18 = arith.constant 16 : index
    %c0_19 = arith.constant 0 : index
    %10 = vector.load %arg2[%c1_15, %c0_16, %c0_17, %c16_18, %c0_19] : memref<2x1x1x160x8xbf16, #tpu.memory_space<vmem>>, vector<1x1x1x128x8xbf16>
    %11 = vector.shape_cast %10 : vector<1x1x1x128x8xbf16> to vector<128x8xbf16>
    %12 = tpu.concatenate %9, %11 in 1 : vector<128x8xbf16>, vector<128x8xbf16> -> vector<128x16xbf16>
    %c1_20 = arith.constant 1 : index
    %c0_21 = arith.constant 0 : index
    %c0_22 = arith.constant 0 : index
    %13 = vector.load %arg3[%c1_20, %c0_21, %c0_22] : memref<4x16x32xbf16, #tpu.memory_space<vmem>>, vector<1x16x32xbf16>
    %14 = vector.shape_cast %13 : vector<1x16x32xbf16> to vector<16x32xbf16>
    %cst_23 = arith.constant dense<0.000000e+00> : vector<128x32xf32>
    %15 = tpu.matmul %12, %14, %cst_23 {dimension_numbers = #tpu.dot_dimension_numbers<[1], [0], [0], [1], [0, 0, 1, 1], [], []>} : vector<128x16xbf16>, vector<16x32xbf16>, vector<128x32xf32> -> vector<128x32xf32>
    %c0_24 = arith.constant 0 : index
    %c0_25 = arith.constant 0 : index
    %c0_26 = arith.constant 0 : index
    %c16_27 = arith.constant 16 : index
    %c0_28 = arith.constant 0 : index
    %16 = vector.load %arg2[%c0_24, %c0_25, %c0_26, %c16_27, %c0_28] : memref<2x1x1x160x8xbf16, #tpu.memory_space<vmem>>, vector<1x1x1x128x8xbf16>
    %17 = vector.shape_cast %16 : vector<1x1x1x128x8xbf16> to vector<128x8xbf16>
    %c0_29 = arith.constant 0 : index
    %c0_30 = arith.constant 0 : index
    %c0_31 = arith.constant 0 : index
    %c32 = arith.constant 32 : index
    %c0_32 = arith.constant 0 : index
    %18 = vector.load %arg2[%c0_29, %c0_30, %c0_31, %c32, %c0_32] : memref<2x1x1x160x8xbf16, #tpu.memory_space<vmem>>, vector<1x1x1x128x8xbf16>
    %19 = vector.shape_cast %18 : vector<1x1x1x128x8xbf16> to vector<128x8xbf16>
    %20 = tpu.concatenate %17, %19 in 1 : vector<128x8xbf16>, vector<128x8xbf16> -> vector<128x16xbf16>
    %c2 = arith.constant 2 : index
    %c0_33 = arith.constant 0 : index
    %c0_34 = arith.constant 0 : index
    %21 = vector.load %arg3[%c2, %c0_33, %c0_34] : memref<4x16x32xbf16, #tpu.memory_space<vmem>>, vector<1x16x32xbf16>
    %22 = vector.shape_cast %21 : vector<1x16x32xbf16> to vector<16x32xbf16>
    %cst_35 = arith.constant dense<0.000000e+00> : vector<128x32xf32>
    %23 = tpu.matmul %20, %22, %cst_35 {dimension_numbers = #tpu.dot_dimension_numbers<[1], [0], [0], [1], [0, 0, 1, 1], [], []>} : vector<128x16xbf16>, vector<16x32xbf16>, vector<128x32xf32> -> vector<128x32xf32>
    %c1_36 = arith.constant 1 : index
    %c0_37 = arith.constant 0 : index
    %c0_38 = arith.constant 0 : index
    %c16_39 = arith.constant 16 : index
    %c0_40 = arith.constant 0 : index
    %24 = vector.load %arg2[%c1_36, %c0_37, %c0_38, %c16_39, %c0_40] : memref<2x1x1x160x8xbf16, #tpu.memory_space<vmem>>, vector<1x1x1x128x8xbf16>
    %25 = vector.shape_cast %24 : vector<1x1x1x128x8xbf16> to vector<128x8xbf16>
    %c1_41 = arith.constant 1 : index
    %c0_42 = arith.constant 0 : index
    %c0_43 = arith.constant 0 : index
    %c32_44 = arith.constant 32 : index
    %c0_45 = arith.constant 0 : index
    %26 = vector.load %arg2[%c1_41, %c0_42, %c0_43, %c32_44, %c0_45] : memref<2x1x1x160x8xbf16, #tpu.memory_space<vmem>>, vector<1x1x1x128x8xbf16>
    %27 = vector.shape_cast %26 : vector<1x1x1x128x8xbf16> to vector<128x8xbf16>
    %28 = tpu.concatenate %25, %27 in 1 : vector<128x8xbf16>, vector<128x8xbf16> -> vector<128x16xbf16>
    %c3 = arith.constant 3 : index
    %c0_46 = arith.constant 0 : index
    %c0_47 = arith.constant 0 : index
    %29 = vector.load %arg3[%c3, %c0_46, %c0_47] : memref<4x16x32xbf16, #tpu.memory_space<vmem>>, vector<1x16x32xbf16>
    %30 = vector.shape_cast %29 : vector<1x16x32xbf16> to vector<16x32xbf16>
    %cst_48 = arith.constant dense<0.000000e+00> : vector<128x32xf32>
    %31 = tpu.matmul %28, %30, %cst_48 {dimension_numbers = #tpu.dot_dimension_numbers<[1], [0], [0], [1], [0, 0, 1, 1], [], []>} : vector<128x16xbf16>, vector<16x32xbf16>, vector<128x32xf32> -> vector<128x32xf32>
    %32 = tpu.concatenate %7, %15, %23, %31 in 1 : vector<128x32xf32>, vector<128x32xf32>, vector<128x32xf32>, vector<128x32xf32> -> vector<128x128xf32>
    %cst_49 = arith.constant dense<0.000000e+00> : vector<128xf32>
    %33 = vector.multi_reduction <add>, %32, %cst_49 [0] : vector<128x128xf32> to vector<128xf32>
    %34 = vector.shape_cast %33 : vector<128xf32> to vector<1x128xf32>
    %35 = arith.mulf %32, %32 : vector<128x128xf32>
    %cst_50 = arith.constant dense<0.000000e+00> : vector<128xf32>
    %36 = vector.multi_reduction <add>, %35, %cst_50 [0] : vector<128x128xf32> to vector<128xf32>
    %37 = vector.shape_cast %36 : vector<128xf32> to vector<1x128xf32>
    %38 = tpu.concatenate %34, %37 in 0 : vector<1x128xf32>, vector<1x128xf32> -> vector<2x128xf32>
    %c0_51 = arith.constant 0 : index
    %c0_52 = arith.constant 0 : index
    %c0_53 = arith.constant 0 : index
    %c0_54 = arith.constant 0 : index
    %39 = vector.load %arg5[%c0_51, %c0_52, %c0_53, %c0_54] : memref<1x1x2x128xf32, #tpu.memory_space<vmem>>, vector<1x1x2x128xf32>
    %40 = vector.shape_cast %39 : vector<1x1x2x128xf32> to vector<2x128xf32>
    %41 = vector.shape_cast %38 : vector<2x128xf32> to vector<1x1x2x128xf32>
    tpu.vector_store %arg5[%c0_51, %c0_52, %c0_53, %c0_54], %41 {strides = array<i32>} : memref<1x1x2x128xf32, #tpu.memory_space<vmem>>, vector<1x1x2x128xf32>,
    %42 = vector.shape_cast %32 : vector<128x128xf32> to vector<8x16x128xf32>
    %43 = arith.truncf %42 : vector<8x16x128xf32> to vector<8x16x128xbf16>
    %c0_55 = arith.constant 0 : index
    %c0_56 = arith.constant 0 : index
    %c0_57 = arith.constant 0 : index
    %c0_58 = arith.constant 0 : index
    %c0_59 = arith.constant 0 : index
    %44 = vector.load %arg4[%c0_55, %c0_56, %c0_57, %c0_58, %c0_59] : memref<1x1x8x16x128xbf16, #tpu.memory_space<vmem>>, vector<1x1x8x16x128xbf16>
    %45 = vector.shape_cast %44 : vector<1x1x8x16x128xbf16> to vector<8x16x128xbf16>
    %46 = vector.shape_cast %43 : vector<8x16x128xbf16> to vector<1x1x8x16x128xbf16>
    tpu.vector_store %arg4[%c0_55, %c0_56, %c0_57, %c0_58, %c0_59], %46 {strides = array<i32>} : memref<1x1x8x16x128xbf16, #tpu.memory_space<vmem>>, vector<1x1x8x16x128xbf16>,
    return
  }
  func.func @transform_0(%arg0: i32, %arg1: i32) -> (i32, i32, i32, i32, i32) {
    %c0_i32 = arith.constant 0 : i32
    %c0_i32_0 = arith.constant 0 : i32
    %c0_i32_1 = arith.constant 0 : i32
    %c0_i32_2 = arith.constant 0 : i32
    return %c0_i32, %arg0, %arg1, %c0_i32_0, %c0_i32_1 : i32, i32, i32, i32, i32
  }
  func.func @transform_1(%arg0: i32, %arg1: i32) -> (i32, i32, i32) {
    %c0_i32 = arith.constant 0 : i32
    %c0_i32_0 = arith.constant 0 : i32
    %c0_i32_1 = arith.constant 0 : i32
    %c0_i32_2 = arith.constant 0 : i32
    return %c0_i32, %c0_i32_0, %c0_i32_1 : i32, i32, i32
  }
  func.func @transform_2(%arg0: i32, %arg1: i32) -> (i32, i32, i32, i32, i32) {
    %c0_i32 = arith.constant 0 : i32
    %c0_i32_0 = arith.constant 0 : i32
    %c0_i32_1 = arith.constant 0 : i32
    %c0_i32_2 = arith.constant 0 : i32
    return %arg0, %arg1, %c0_i32, %c0_i32_0, %c0_i32_1 : i32, i32, i32, i32, i32
  }
  func.func @transform_3(%arg0: i32, %arg1: i32) -> (i32, i32, i32, i32) {
    %c0_i32 = arith.constant 0 : i32
    %c0_i32_0 = arith.constant 0 : i32
    %c0_i32_1 = arith.constant 0 : i32
    return %arg0, %arg1, %c0_i32, %c0_i32_0 : i32, i32, i32, i32
  }
}

</mosaic_0001>

<bundles_post_ra>
// kernel: tpu_custom_call.1
= control target key start
LH: loop header
LB: loop body
LE: loop exit
PB: predicated region body
PF: predicated region fallthrough
CT: control target
= control target key end

     0   :  { %9 = vsyncpa [#allocation4], 0  ;;  %s3044_s0 = inlined_call_operand.vmem [shape: bf16[2,2,2,160,8], index: 0, kind: input, shape index: {}]   ;;  %s3045_s1 = inlined_call_operand.vmem [shape: bf16[4,16,32], index: 1, kind: input, shape index: {}]   ;;  %s3046_s2 = inlined_call_operand.hbm [shape: bf16[2,2,8,16,128], index: 2, kind: output, shape index: {0}]   ;;  %s3047_s3 = inlined_call_operand.hbm [shape: f32[2,2,2,128], index: 3, kind: output, shape index: {1}]  }
   0x1   :  { %11 = vsyncpa [#allocation4 + $0x1], 0 }
   0x2   :  { %12 = vsyncpa [#allocation6], 0 }
   0x3   :  { %14 = vsyncpa [#allocation6 + $0x1], 0  ;;  %s2404_s12 = smov 0   ;;  %s2406_s13 = smov 0  }
   0x4   :  { %s2408_s14 = smov 0   ;;  %s2410_s15 = smov 0  }
   0x5   :  { %s2412_s16 = smov 0   ;;  %s2414_s17 = smov 0  }
   0x6   :  { %s2416_s18 = smov 0   ;;  %s2418_s19 = smov 0  }
   0x7 LB: > { %s1812_s20 = sadd.s32 4294967295, %s2375_s19   ;;  %s1813_s21 = sadd.s32 4294967294, %s2375_s19   ;;  %s2375_s19 = sphi %s2418_s19, %s20_s19   ;;  %s2371_s18 = sphi %s2416_s18, %s3057_s18   ;;  %s2367_s17 = sphi %s2414_s17, %s3056_s17   ;;  %s2363_s16 = sphi %s2412_s16, %s3055_s16   ;;  %s2359_s15 = sphi %s2410_s15, %s3054_s15   ;;  %s2355_s14 = sphi %s2408_s14, %s3053_s14   ;;  %s2351_s13 = sphi %s2406_s13, %s3052_s13   ;;  %s2347_s12 = sphi %s2404_s12, %s3051_s12  }
   0x8   : > { %s29_s22 = sadd.s32 1, %s2367_s17  ;;  %s32_s23 = sadd.s32 1, %s2371_s18 }
   0x9   : > { %p30_p0 = scmp.ge.s32.totalorder %s29_s22, 2  ;;  %p48_p1 = scmp.ne.s32.totalorder %s2355_s14, %s2351_s13 }
   0xa   : > { %p49_p2 = scmp.eq.s32.totalorder %s2375_s19, 0  ;;  %p101_p5 = scmp.eq.s32.totalorder %s1812_s20, 3 }
   0xb   : > { %s3059_s22 = smov (%p30_p0, %s29_s22), 0  ;;  %s3061_s23 = smov (!%p30_p0, %s32_s23), %s2371_s18 }
   0xc   : > { %s37_s24 = ssub.s32 %s2367_s17, %s3059_s22  ;;  %p2456_p3 = por %p49_p2, %p48_p1 }
   0xd   : > { %p34_p4 = scmp.ge.s32.totalorder %s3061_s23, 2  ;;  %p106_p6 = scmp.ne.s32.totalorder %s2351_s13, %s2347_s12 }
   0xe   : > { %p107_p7 = scmp.eq.s32.totalorder %s1813_s21, 3  ;;  %p2464_p8 = por %p101_p5, %p48_p1 }
   0xf   : > { %s3063_s23 = smov (%p34_p4, %s3061_s23), 0  ;;  %s41_s30 = sadd.s32 1, %s2355_s14 }
  0x10   : > { %p2468_p9 = por %p107_p7, %p106_p6  ;;  %s36_s28 = ssub.s32 %s2371_s18, %s3063_s23 }
  0x11   : > { %s38_s29 = sor.u32 %s37_s24, %s36_s28  ;;  %p1815_p11 = scmp.ge.s32.totalorder %s2375_s19, 4 }
  0x12   : > { %p39_p10 = scmp.eq.s32.totalorder %s38_s29, 0 }
  0x13   : > { %154 = sbr.rel (%p1815_p11) target bundleno = 45 (0x2d), region = 20 }
  0x14   : > { %s2476_s4 = scalar_select %p39_p10, %s2355_s14, %s41_s30  }
  0x1a   : > { %157 = sbr.rel (!%p2456_p3) target bundleno = 45 (0x2d), region = 24  ;;  %s159_s5 = sand.u32 (%p2456_p3), 1, %s2355_s14  }
  0x1b   : > { %s2127_s6 = smul.u32 (%p2456_p3), 20, %s2367_s17 }
  0x1c   : > { %s2126_s7 = smul.u32 (%p2456_p3), 160, %s159_s5 }
  0x1d   : > { %s2128_s8 = smul.u32 (%p2456_p3), 40, %s2371_s18 }
  0x1e   : > { %s2492_s24 = scalar_lea.vmem (%p2456_p3), [#allocation2], %s2126_s7 }
  0x1f   : > { %s164_s9 = sadd.s32 (%p2456_p3), %s2128_s8, %s2127_s6 }
  0x20   : > { %s1816_s10 = sshll.u32 (%p2456_p3), %s164_s9, 2 }
  0x21   : > { %s2487_s21 = scalar_lea.vmem %s3044_s0, %s1816_s10 }
  0x22   : > { %v182_v0 = vld [vmem:[%s2487_s21] sm:$0xff]   ;;  %v186_v1 = vld [vmem:[%s2487_s21 + $0x8] sm:$0xff]   ;;  %v190_v2 = vld [vmem:[%s2487_s21 + $0x10] sm:$0xff]  }
  0x23   : > { %183 = vst [vmem:[%s2492_s24] sm:$0xff] %v182_v0   ;;  %187 = vst [vmem:[%s2492_s24 + $0x8] sm:$0xff] %v186_v1   ;;  %v194_v3 = vld [vmem:[%s2487_s21 + $0x18] sm:$0xff]   ;;  %v198_v4 = vld [vmem:[%s2487_s21 + $0x20] sm:$0xff]  }
  0x24   : > { %191 = vst [vmem:[%s2492_s24 + $0x10] sm:$0xff] %v190_v2   ;;  %v202_v5 = vld [vmem:[%s2487_s21 + $0x28] sm:$0xff]   ;;  %195 = vst [vmem:[%s2492_s24 + $0x18] sm:$0xff] %v194_v3   ;;  %v206_v6 = vld [vmem:[%s2487_s21 + $0x30] sm:$0xff]  }
  0x25   : > { %199 = vst [vmem:[%s2492_s24 + $0x20] sm:$0xff] %v198_v4   ;;  %203 = vst [vmem:[%s2492_s24 + $0x28] sm:$0xff] %v202_v5   ;;  %v210_v7 = vld [vmem:[%s2487_s21 + $0x38] sm:$0xff]   ;;  %v214_v8 = vld [vmem:[%s2487_s21 + $0x40] sm:$0xff]  }
  0x26   : > { %207 = vst [vmem:[%s2492_s24 + $0x30] sm:$0xff] %v206_v6   ;;  %211 = vst [vmem:[%s2492_s24 + $0x38] sm:$0xff] %v210_v7   ;;  %v218_v9 = vld [vmem:[%s2487_s21 + $0x48] sm:$0xff]   ;;  %v222_v10 = vld [vmem:[%s2487_s21 + $0x140] sm:$0xff]  }
  0x27   : > { %215 = vst [vmem:[%s2492_s24 + $0x40] sm:$0xff] %v214_v8   ;;  %v226_v11 = vld [vmem:[%s2487_s21 + $0x148] sm:$0xff]   ;;  %219 = vst [vmem:[%s2492_s24 + $0x48] sm:$0xff] %v218_v9   ;;  %v230_v12 = vld [vmem:[%s2487_s21 + $0x150] sm:$0xff]  }
  0x28   : > { %223 = vst [vmem:[%s2492_s24 + $0x50] sm:$0xff] %v222_v10   ;;  %227 = vst [vmem:[%s2492_s24 + $0x58] sm:$0xff] %v226_v11   ;;  %v234_v13 = vld [vmem:[%s2487_s21 + $0x158] sm:$0xff]   ;;  %v238_v14 = vld [vmem:[%s2487_s21 + $0x160] sm:$0xff]  }
  0x29   : > { %231 = vst [vmem:[%s2492_s24 + $0x60] sm:$0xff] %v230_v12   ;;  %235 = vst [vmem:[%s2492_s24 + $0x68] sm:$0xff] %v234_v13   ;;  %v242_v15 = vld [vmem:[%s2487_s21 + $0x168] sm:$0xff]   ;;  %v246_v16 = vld [vmem:[%s2487_s21 + $0x170] sm:$0xff]  }
  0x2a   : > { %239 = vst [vmem:[%s2492_s24 + $0x70] sm:$0xff] %v238_v14   ;;  %v250_v17 = vld [vmem:[%s2487_s21 + $0x178] sm:$0xff]   ;;  %243 = vst [vmem:[%s2492_s24 + $0x78] sm:$0xff] %v242_v15   ;;  %v254_v18 = vld [vmem:[%s2487_s21 + $0x180] sm:$0xff]  }
  0x2b   : > { %247 = vst [vmem:[%s2492_s24 + $0x80] sm:$0xff] %v246_v16   ;;  %251 = vst [vmem:[%s2492_s24 + $0x88] sm:$0xff] %v250_v17   ;;  %v258_v19 = vld [vmem:[%s2487_s21 + $0x188] sm:$0xff]  }
  0x2c   : > { %255 = vst [vmem:[%s2492_s24 + $0x90] sm:$0xff] %v254_v18   ;;  %259 = vst [vmem:[%s2492_s24 + $0x98] sm:$0xff] %v258_v19  }
  0x2d PF: > { %p1817_p12 = scmp.ge.s32.totalorder %s2375_s19, 1  ;;  %p363_p13 = scmp.lt.s32.totalorder %s2375_s19, 5 }
  0x2f   : > { %p364_p0 = pnand %p1817_p12, %p363_p13 }
  0x30   : > { %s2534_s25 = sand.u32 (!%p364_p0), 1, %s2351_s13   ;;  %v2243_v20 = vld [vmem:[%s3045_s1] sm:$0xff] (!%p364_p0)   ;;  %v2245_v21 = vld [vmem:[%s3045_s1 + $0x8] sm:$0xff] (!%p364_p0)   ;;  %v2546_v22 = vld [vmem:[%s3045_s1 + $0x10] sm:$0xff] (!%p364_p0)   ;;  %s2377_s10 = smov (!%p364_p0), 8   ;;  %vm478_vm0 = vcmask (!%p364_p0), 64512  }
  0x31   : > { %367 = sbr.rel (%p364_p0) target bundleno = 642 (0x282), region = 65  ;;  %2054 = vmatprep.subr.bf16.mxu0 (!%p364_p0), %v2243_v20  ;;  %2072 = vmatprep.subr.bf16.mxu1 (!%p364_p0), %v2245_v21  ;;  %v2248_v42 = vld [vmem:[%s3045_s1 + $0x18] sm:$0xff] (!%p364_p0)   ;;  %vm511_vm1 = vcmask (!%p364_p0), 130048   ;;  %s2378_s21 = smov (!%p364_p0), 32   ;;  %vm1465_vm2 = vcmask (!%p364_p0), 261120   ;;  %vm1482_vm3 = vcmask (!%p364_p0), 523264  }
  0x32   : > { %s2129_s28 = smul.u32 (!%p364_p0), 160, %s2534_s25  ;;  %2055 = vmatpush3.bf16.msra.mxu0 (!%p364_p0), %v2243_v20  ;;  %2073 = vmatpush3.bf16.msra.mxu1 (!%p364_p0), %v2245_v21  ;;  %s2379_s24 = smov (!%p364_p0), 64   ;;  %vm1499_vm4 = vcmask (!%p364_p0), 785408  }
  0x33   : > { %2090 = vmatprep.subr.bf16.mxu0 (!%p364_p0), %v2546_v22  ;;  %2108 = vmatprep.subr.bf16.mxu1 (!%p364_p0), %v2248_v42  ;;  %s1818_s29 = sshll.u32 (!%p364_p0), %s2534_s25, 6  ;;  %s1948_s5 = sshll.u32 (!%p364_p0), %s2359_s15, 4 }
  0x34   : > { %s2548_s9 = scalar_lea.vmem (!%p364_p0), [#allocation2], %s2129_s28  ;;  %s2380_s28 = smov (!%p364_p0), 96  }
  0x35   : > { %v2551_v23 = vld [vmem:[%s2548_s9 + $0x58] sm:$0xff] (!%p364_p0)   ;;  %v2554_v24 = vld [vmem:[%s2548_s9 + $0x8] sm:$0xff] (!%p364_p0)   ;;  %v2560_v25 = vld [vmem:[%s2548_s9 + $0x60] sm:$0xff] (!%p364_p0)   ;;  %s2882_s30 = scalar_lea.vmem (!%p364_p0), [#allocation3], %s1818_s29  ;;  %s1949_s6 = sshll.u32 (!%p364_p0), %s2363_s16, 5 }
  0x36   : > { %689 = vrot.lane.b32.xlu1 (!%p364_p0), %v2551_v23, %s2377_s10  ;;  %462 = vrot.lane.b32.xlu0 (!%p364_p0), %v2554_v24, %s2377_s10  ;;  %v2565_v26 = vld [vmem:[%s2548_s9 + $0x10] sm:$0xff] (!%p364_p0)   ;;  %v2570_v27 = vld [vmem:[%s2548_s9 + $0x20] sm:$0xff] (!%p364_p0)   ;;  %s1675_s7 = sadd.s32 (!%p364_p0), %s1949_s6, %s1948_s5  ;;  %s1678_s8 = sshll.u32 (!%p364_p0), %s2882_s30, 4  ;;  %s2950_s8 = int_to_ptr.vmem [resolvable:$true] %s1678_s8 }
  0x37   : > { %v2575_v28 = vld [vmem:[%s2548_s9 + $0x18] sm:$0xff] (!%p364_p0)   ;;  %v2580_v29 = vld [vmem:[%s2548_s9 + $0x70] sm:$0xff] (!%p364_p0)   ;;  %v2585_v30 = vld [vmem:[%s2548_s9 + $0x68] sm:$0xff] (!%p364_p0)   ;;  %s2381_s29 = smov (!%p364_p0), [#allocation3]  }
  0x38   : > { %v2590_v31 = vld [vmem:[%s2548_s9 + $0x30] sm:$0xff]   ;;  %v2595_v32 = vld [vmem:[%s2548_s9 + $0x28] sm:$0xff]   ;;  %v2600_v33 = vld [vmem:[%s2548_s9 + $0x80] sm:$0xff]   ;;  %s2253_s5 = sshll.u32 %s2381_s29, 4  ;;  %s2254_s5 = int_to_ptr.vmem [resolvable:$false] %s2253_s5 }
  0x39   : > { %v2605_v34 = vld [vmem:[%s2548_s9 + $0x78] sm:$0xff]   ;;  %v2610_v35 = vld [vmem:[%s2548_s9 + $0x40] sm:$0xff]   ;;  %v2620_v37 = vld [vmem:[%s2548_s9 + $0x90] sm:$0xff]   ;;  %s2255_s6 = scalar_lea.vmem %s2254_s5, 2048  ;;  %p2256_p4 = scmp.lt.s32.totalorder %s2950_s8, %s2254_s5 }
  0x3a   : > { %691 = vrot.lane.b32.xlu1 %v2560_v25, %s2377_s10  ;;  %464 = vrot.lane.b32.xlu0 %v2565_v26, %s2377_s10  ;;  %v2615_v36 = vld [vmem:[%s2548_s9 + $0x38] sm:$0xff]   ;;  %v2625_v38 = vld [vmem:[%s2548_s9 + $0x88] sm:$0xff]  }
  0x3b   : > { %v2228_v39 = vld [vmem:[%s2548_s9 + $0x18] sm:$0xff]   ;;  %v2227_v40 = vld [vmem:[%s2548_s9 + $0x10] sm:$0xff]   ;;  %v2230_v41 = vld [vmem:[%s2548_s9 + $0x68] sm:$0xff]  }
  0x3c   : > { %v2229_v43 = vld [vmem:[%s2548_s9 + $0x60] sm:$0xff]   ;;  %v2232_v44 = vld [vmem:[%s2548_s9 + $0x28] sm:$0xff]   ;;  %v2234_v46 = vld [vmem:[%s2548_s9 + $0x78] sm:$0xff]  }
  0x3d   : > { %v2231_v45 = vld [vmem:[%s2548_s9 + $0x20] sm:$0xff]   ;;  %v2233_v47 = vld [vmem:[%s2548_s9 + $0x70] sm:$0xff]   ;;  %v2236_v48 = vld [vmem:[%s2548_s9 + $0x38] sm:$0xff]  }
  0x3e   : > { %468 = vrot.lane.b32.xlu1 %v2570_v27, %s2377_s10  ;;  %466 = vrot.lane.b32.xlu0 %v2575_v28, %s2377_s10  ;;  %v2235_v49 = vld [vmem:[%s2548_s9 + $0x30] sm:$0xff]   ;;  %v2238_v50 = vld [vmem:[%s2548_s9 + $0x88] sm:$0xff]  }
  0x3f   : > { %v2237_v51 = vld [vmem:[%s2548_s9 + $0x80] sm:$0xff]   ;;  %v2240_v52 = vld [vmem:[%s2548_s9 + $0x48] sm:$0xff]   ;;  %v2242_v54 = vld [vmem:[%s2548_s9 + $0x98] sm:$0xff]  }
  0x40   : > { %v2239_v53 = vld [vmem:[%s2548_s9 + $0x40] sm:$0xff]   ;;  %v2241_v55 = vld [vmem:[%s2548_s9 + $0x90] sm:$0xff]  }
  0x41   : > { %v2246_v56 = vld [vmem:[%s2548_s9 + $0x50] sm:$0xff]   ;;  %v2244_v57 = vld [vmem:[%s2548_s9] sm:$0xff]   ;;  %s1950_s9 = sshll.u32 %s1675_s7, 6 }
  0x42   : > { %695 = vrot.lane.b32.xlu1 %v2580_v29, %s2377_s10  ;;  %693 = vrot.lane.b32.xlu0 %v2585_v30, %s2377_s10  ;;  %s2955_s20 = scalar_lea.hbm %s3046_s2, %s1950_s9 }
  0x46   : > { %472 = vrot.lane.b32.xlu1 %v2590_v31, %s2377_s10  ;;  %470 = vrot.lane.b32.xlu0 %v2595_v32, %s2377_s10 }
  0x4a   : > { %699 = vrot.lane.b32.xlu1 %v2600_v33, %s2377_s10  ;;  %697 = vrot.lane.b32.xlu0 %v2605_v34, %s2377_s10 }
  0x4e   : > { %476 = vrot.lane.b32.xlu1 %v2610_v35, %s2377_s10  ;;  %474 = vrot.lane.b32.xlu0 %v2615_v36, %s2377_s10 }
  0x52   : > { %703 = vrot.lane.b32.xlu1 %v2620_v37, %s2377_s10  ;;  %701 = vrot.lane.b32.xlu0 %v2625_v38, %s2377_s10 }
  0x56   : > { %909 = vrot.lane.b32.xlu1 %v2228_v39, %s2377_s10  ;;  %907 = vrot.lane.b32.xlu0 %v2227_v40, %s2377_s10 }
  0x5a   : > { %1120 = vrot.lane.b32.xlu1 %v2230_v41, %s2377_s10  ;;  %1118 = vrot.lane.b32.xlu0 %v2229_v43, %s2377_s10 }
  0x5e   : > { %913 = vrot.lane.b32.xlu1 %v2232_v44, %s2377_s10  ;;  %911 = vrot.lane.b32.xlu0 %v2231_v45, %s2377_s10 }
  0x62   : > { %1124 = vrot.lane.b32.xlu1 %v2234_v46, %s2377_s10  ;;  %1122 = vrot.lane.b32.xlu0 %v2233_v47, %s2377_s10 }
  0x66   : > { %917 = vrot.lane.b32.xlu1 %v2236_v48, %s2377_s10  ;;  %915 = vrot.lane.b32.xlu0 %v2235_v49, %s2377_s10 }
  0x6a   : > { %1128 = vrot.lane.b32.xlu1 %v2238_v50, %s2377_s10  ;;  %1126 = vrot.lane.b32.xlu0 %v2237_v51, %s2377_s10 }
  0x6e   : > { %921 = vrot.lane.b32.xlu1 %v2240_v52, %s2377_s10  ;;  %919 = vrot.lane.b32.xlu0 %v2239_v53, %s2377_s10 }
  0x72   : > { %1132 = vrot.lane.b32.xlu1 %v2242_v54, %s2377_s10  ;;  %1130 = vrot.lane.b32.xlu0 %v2241_v55, %s2377_s10 }
  0xa8   : > { %v690_v58 = vpop.permute.xlu1 %689  ;;  %v463_v59 = vpop.permute.xlu0 %462 }
  0xa9   : > { %v707_v60 = vsel %vm478_vm0, %v2246_v56, %v690_v58  ;;  %v481_v61 = vsel %vm478_vm0, %v2244_v57, %v463_v59 }
  0xaa   : > { %2074 = vmatprep.mubr.msk.bf16.mxu1 %vm511_vm1, %v707_v60  ;;  %2056 = vmatprep.mubr.msk.bf16.mxu0 %vm511_vm1, %v481_v61 }
  0xac   : > { %v692_v62 = vpop.permute.xlu1 %691  ;;  %v465_v0 = vpop.permute.xlu0 %464 }
  0xad   : > { %v710_v63 = vsel %vm478_vm0, %v2551_v23, %v692_v62  ;;  %v484_v1 = vsel %vm478_vm0, %v2554_v24, %v465_v0 }
  0xae   : > { %2075 = vmatmul.mubr.msk.bf16.vlgmr.msra.gmra.mrb[0].mxu1 %vm511_vm1, %v710_v63  ;;  %2057 = vmatmul.mubr.msk.bf16.vlgmr.msra.gmra.mrb[0].mxu0 %vm511_vm1, %v484_v1 }
  0xaf   : > { %2109 = vmatpush3.bf16.msra.mxu1 %v2248_v42  ;;  %2091 = vmatpush3.bf16.msra.mxu0 %v2546_v22 }
  0xb0   : > { %v469_v2 = vpop.permute.xlu1 %468  ;;  %v467_v3 = vpop.permute.xlu0 %466 }
  0xb1   : > { %v487_v4 = vsel %vm478_vm0, %v2565_v26, %v467_v3  ;;  %v490_v8 = vsel %vm478_vm0, %v2575_v28, %v469_v2 }
  0xb2   : > { %2060 = vmatprep.mubr.msk.bf16.mxu0 %vm511_vm1, %v487_v4 }
  0xb4   : > { %v696_v5 = vpop.permute.xlu1 %695  ;;  %v694_v6 = vpop.permute.xlu0 %693 }
  0xb5   : > { %v716_v7 = vsel %vm478_vm0, %v2585_v30, %v696_v5  ;;  %v713_v9 = vsel %vm478_vm0, %v2560_v25, %v694_v6 }
  0xb6   : > { %2061 = vmatmul.mubr.msk.bf16.gmra.mrb[4].mxu0 %vm511_vm1, %v490_v8  ;;  %2078 = vmatprep.mubr.msk.bf16.mxu1 %vm511_vm1, %v713_v9 }
  0xb7   : > { %2079 = vmatmul.mubr.msk.bf16.gmra.mrb[4].mxu1 %vm511_vm1, %v716_v7 }
  0xb8   : > { %v473_v10 = vpop.permute.xlu1 %472  ;;  %v471_v11 = vpop.permute.xlu0 %470 }
  0xb9   : > { %v493_v12 = vsel %vm478_vm0, %v2570_v27, %v471_v11  ;;  %v496_v16 = vsel %vm478_vm0, %v2595_v32, %v473_v10 }
  0xba   : > { %2064 = vmatprep.mubr.msk.bf16.mxu0 %vm511_vm1, %v493_v12 }
  0xbc   : > { %v700_v13 = vpop.permute.xlu1 %699  ;;  %v698_v14 = vpop.permute.xlu0 %697 }
  0xbd   : > { %v722_v15 = vsel %vm478_vm0, %v2605_v34, %v700_v13  ;;  %v719_v17 = vsel %vm478_vm0, %v2580_v29, %v698_v14 }
  0xbe   : > { %2065 = vmatmul.mubr.msk.bf16.gmra.mrb[8].mxu0 %vm511_vm1, %v496_v16  ;;  %2082 = vmatprep.mubr.msk.bf16.mxu1 %vm511_vm1, %v719_v17 }
  0xbf   : > { %2083 = vmatmul.mubr.msk.bf16.gmra.mrb[8].mxu1 %vm511_vm1, %v722_v15 }
  0xc0   : > { %v477_v18 = vpop.permute.xlu1 %476  ;;  %v475_v19 = vpop.permute.xlu0 %474 }
  0xc1   : > { %v499_v20 = vsel %vm478_vm0, %v2590_v31, %v475_v19  ;;  %v502_v40 = vsel %vm478_vm0, %v2615_v36, %v477_v18 }
  0xc2   : > { %2068 = vmatprep.mubr.msk.bf16.mxu0 %vm511_vm1, %v499_v20 }
  0xc4   : > { %v704_v21 = vpop.permute.xlu1 %703  ;;  %v702_v22 = vpop.permute.xlu0 %701 }
  0xc5   : > { %v728_v39 = vsel %vm478_vm0, %v2625_v38, %v704_v21  ;;  %v725_v41 = vsel %vm478_vm0, %v2600_v33, %v702_v22 }
  0xc6   : > { %2069 = vmatmul.mubr.msk.bf16.gmra.mrb[12].mxu0 %vm511_vm1, %v502_v40  ;;  %2086 = vmatprep.mubr.msk.bf16.mxu1 %vm511_vm1, %v725_v41 }
  0xc7   : > { %2087 = vmatmul.mubr.msk.bf16.gmra.mrb[12].mxu1 %vm511_vm1, %v728_v39 }
  0xc8   : > { %v910_v42 = vpop.permute.xlu1 %909  ;;  %v908_v43 = vpop.permute.xlu0 %907 }
  0xc9   : > { %v924_v44 = vsel %vm478_vm0, %v2554_v24, %v908_v43  ;;  %v926_v45 = vsel %vm478_vm0, %v2565_v26, %v910_v42 }
  0xca   : > { %2092 = vmatprep.mubr.msk.bf16.mxu0 %vm511_vm1, %v924_v44 }
  0xcc   : > { %v1121_v46 = vpop.permute.xlu1 %1120  ;;  %v1119_v47 = vpop.permute.xlu0 %1118 }
  0xcd   : > { %v1137_v48 = vsel %vm478_vm0, %v2560_v25, %v1121_v46  ;;  %v1135_v49 = vsel %vm478_vm0, %v2551_v23, %v1119_v47 }
  0xce   : > { %2093 = vmatmul.mubr.msk.bf16.vlgmr.msra.gmra.mrb[16].mxu0 %vm511_vm1, %v926_v45  ;;  %2110 = vmatprep.mubr.msk.bf16.mxu1 %vm511_vm1, %v1135_v49 }
  0xcf   : > { %2111 = vmatmul.mubr.msk.bf16.vlgmr.msra.gmra.mrb[16].mxu1 %vm511_vm1, %v1137_v48 }
  0xd0   : > { %v914_v24 = vpop.permute.xlu1 %913  ;;  %v912_v50 = vpop.permute.xlu0 %911 }
  0xd1   : > { %v928_v51 = vsel %vm478_vm0, %v2575_v28, %v912_v50  ;;  %v930_v26 = vsel %vm478_vm0, %v2570_v27, %v914_v24 }
  0xd2   : > { %2096 = vmatprep.mubr.msk.bf16.mxu0 %vm511_vm1, %v928_v51 }
  0xd4   : > { %v1125_v25 = vpop.permute.xlu1 %1124  ;;  %v1123_v52 = vpop.permute.xlu0 %1122 }
  0xd5   : > { %v1141_v23 = vsel %vm478_vm0, %v2580_v29, %v1125_v25  ;;  %v1139_v53 = vsel %vm478_vm0, %v2585_v30, %v1123_v52 }
  0xd6   : > { %2097 = vmatmul.mubr.msk.bf16.gmra.mrb[20].mxu0 %vm511_vm1, %v930_v26  ;;  %2114 = vmatprep.mubr.msk.bf16.mxu1 %vm511_vm1, %v1139_v53 }
  0xd7   : > { %2115 = vmatmul.mubr.msk.bf16.gmra.mrb[20].mxu1 %vm511_vm1, %v1141_v23 }
  0xd8   : > { %v918_v28 = vpop.permute.xlu1 %917  ;;  %v916_v54 = vpop.permute.xlu0 %915 }
  0xd9   : > { %v932_v55 = vsel %vm478_vm0, %v2595_v32, %v916_v54  ;;  %v934_v27 = vsel %vm478_vm0, %v2590_v31, %v918_v28 }
  0xda   : > { %2100 = vmatprep.mubr.msk.bf16.mxu0 %vm511_vm1, %v932_v55 }
  0xdc   : > { %v1129_v29 = vpop.permute.xlu1 %1128  ;;  %v1127_v56 = vpop.permute.xlu0 %1126 }
  0xdd   : > { %v1145_v30 = vsel %vm478_vm0, %v2600_v33, %v1129_v29  ;;  %v1143_v57 = vsel %vm478_vm0, %v2605_v34, %v1127_v56 }
  0xde   : > { %2101 = vmatmul.mubr.msk.bf16.gmra.mrb[24].mxu0 %vm511_vm1, %v934_v27  ;;  %2118 = vmatprep.mubr.msk.bf16.mxu1 %vm511_vm1, %v1143_v57 }
  0xdf   : > { %2119 = vmatmul.mubr.msk.bf16.gmra.mrb[24].mxu1 %vm511_vm1, %v1145_v30 }
  0xe0   : > { %v922_v32 = vpop.permute.xlu1 %921  ;;  %v920_v58 = vpop.permute.xlu0 %919 }
  0xe1   : > { %v936_v59 = vsel %vm478_vm0, %v2615_v36, %v920_v58  ;;  %v939_v31 = vsel %vm478_vm0, %v2610_v35, %v922_v32 }
  0xe2   : > { %2104 = vmatprep.mubr.msk.bf16.mxu0 %vm511_vm1, %v936_v59 }
  0xe4   : > { %v1133_v33 = vpop.permute.xlu1 %1132  ;;  %v1131_v60 = vpop.permute.xlu0 %1130 }
  0xe5   : > { %v1150_v34 = vsel %vm478_vm0, %v2620_v37, %v1133_v33  ;;  %v1147_v61 = vsel %vm478_vm0, %v2625_v38, %v1131_v60 }
  0xe6   : > { %2105 = vmatmul.mubr.msk.bf16.gmra.mrb[28].mxu0 %vm511_vm1, %v939_v31  ;;  %2122 = vmatprep.mubr.msk.bf16.mxu1 %vm511_vm1, %v1147_v61 }
  0xe7   : > { %2123 = vmatmul.mubr.msk.bf16.gmra.mrb[28].mxu1 %vm511_vm1, %v1150_v34 }
 0x181   : > { %v2076_v36 = vpop.f32.mrb[0].mxu1  ;;  %v2763_v62 = vpop.f32.mrb[0].mxu0 }
 0x182   : > { %v788_v63 = vpop.f32.mrb[1].mxu1  ;;  %1293 = vrot.lane.b32.xlu0 %v2076_v36, %s2378_s21  ;;  %v2766_v35 = vpop.f32.mrb[1].mxu0 }
 0x183   : > { %v2077_v0 = vpop.f32.mrb[2].mxu1  ;;  %v2768_v37 = vpop.f32.mrb[2].mxu0 }
 0x184   : > { %v791_v1 = vpop.f32.mrb[3].mxu1  ;;  %v2770_v38 = vpop.f32.mrb[3].mxu0 }
 0x185   : > { %1291 = vrot.lane.b32.xlu1 %v791_v1, %s2378_s21 }
 0x186   : > { %1289 = vrot.lane.b32.xlu0 %v788_v63, %s2378_s21 }
 0x189   : > { %v2774_v2 = vpop.f32.mrb[4].mxu0 }
 0x18a   : > { %1295 = vrot.lane.b32.xlu0 %v2077_v0, %s2378_s21  ;;  %v2777_v3 = vpop.f32.mrb[5].mxu0  ;;  %v2080_v4 = vpop.f32.mrb[4].mxu1 }
 0x18b   : > { %1301 = vrot.lane.b32.xlu1 %v2080_v4, %s2378_s21  ;;  %v2780_v5 = vpop.f32.mrb[6].mxu0  ;;  %v804_v6 = vpop.f32.mrb[5].mxu1 }
 0x18c   : > { %v2782_v7 = vpop.f32.mrb[7].mxu0  ;;  %v2081_v8 = vpop.f32.mrb[6].mxu1 }
 0x18d   : > { %v807_v9 = vpop.f32.mrb[7].mxu1 }
 0x18e   : > { %1303 = vrot.lane.b32.xlu0 %v2081_v8, %s2378_s21 }
 0x18f   : > { %1297 = vrot.lane.b32.xlu1 %v804_v6, %s2378_s21 }
 0x191   : > { %v2786_v10 = vpop.f32.mrb[8].mxu0 }
 0x192   : > { %1299 = vrot.lane.b32.xlu0 %v807_v9, %s2378_s21  ;;  %v2789_v11 = vpop.f32.mrb[9].mxu0  ;;  %v2084_v12 = vpop.f32.mrb[8].mxu1 }
 0x193   : > { %1309 = vrot.lane.b32.xlu1 %v2084_v12, %s2378_s21  ;;  %v2792_v13 = vpop.f32.mrb[10].mxu0  ;;  %v820_v14 = vpop.f32.mrb[9].mxu1 }
 0x194   : > { %v2794_v15 = vpop.f32.mrb[11].mxu0  ;;  %v2085_v16 = vpop.f32.mrb[10].mxu1 }
 0x195   : > { %v823_v17 = vpop.f32.mrb[11].mxu1 }
 0x196   : > { %1311 = vrot.lane.b32.xlu0 %v2085_v16, %s2378_s21 }
 0x197   : > { %1305 = vrot.lane.b32.xlu1 %v820_v14, %s2378_s21 }
 0x199   : > { %v2798_v18 = vpop.f32.mrb[12].mxu0 }
 0x19a   : > { %1307 = vrot.lane.b32.xlu0 %v823_v17, %s2378_s21  ;;  %v2801_v19 = vpop.f32.mrb[13].mxu0  ;;  %v2088_v20 = vpop.f32.mrb[12].mxu1 }
 0x19b   : > { %1317 = vrot.lane.b32.xlu1 %v2088_v20, %s2378_s21  ;;  %v2804_v21 = vpop.f32.mrb[14].mxu0  ;;  %v836_v22 = vpop.f32.mrb[13].mxu1 }
 0x19c   : > { %v2806_v39 = vpop.f32.mrb[15].mxu0  ;;  %v2089_v40 = vpop.f32.mrb[14].mxu1 }
 0x19d   : > { %v839_v41 = vpop.f32.mrb[15].mxu1 }
 0x19e   : > { %1319 = vrot.lane.b32.xlu0 %v2089_v40, %s2378_s21 }
 0x19f   : > { %1313 = vrot.lane.b32.xlu1 %v836_v22, %s2378_s21 }
 0x1a1   : > { %v2094_v42 = vpop.f32.mrb[16].mxu0 }
 0x1a2   : > { %1315 = vrot.lane.b32.xlu0 %v839_v41, %s2378_s21  ;;  %v999_v43 = vpop.f32.mrb[17].mxu0  ;;  %v2112_v44 = vpop.f32.mrb[16].mxu1  ;;  %s1658_s21 = scalar_lea.sflag [#allocation4], %s2534_s25 }
 0x1a3   : > { %1357 = vrot.lane.b32.xlu1 %v2094_v42, %s2379_s24  ;;  %v2095_v45 = vpop.f32.mrb[18].mxu0  ;;  %v1210_v46 = vpop.f32.mrb[17].mxu1 }
 0x1a4   : > { %v1002_v47 = vpop.f32.mrb[19].mxu0  ;;  %v2113_v48 = vpop.f32.mrb[18].mxu1 }
 0x1a5   : > { %v1213_v49 = vpop.f32.mrb[19].mxu1 }
 0x1a6   : > { %1353 = vrot.lane.b32.xlu0 %v999_v43, %s2379_s24 }
 0x1a7   : > { %1421 = vrot.lane.b32.xlu1 %v2112_v44, %s2380_s28 }
 0x1a9   : > { %v2098_v24 = vpop.f32.mrb[20].mxu0 }
 0x1aa   : > { %1359 = vrot.lane.b32.xlu0 %v2095_v45, %s2379_s24  ;;  %v1015_v50 = vpop.f32.mrb[21].mxu0  ;;  %v2116_v51 = vpop.f32.mrb[20].mxu1 }
 0x1ab   : > { %1417 = vrot.lane.b32.xlu1 %v1210_v46, %s2380_s28  ;;  %v2099_v26 = vpop.f32.mrb[22].mxu0  ;;  %v1226_v25 = vpop.f32.mrb[21].mxu1 }
 0x1ac   : > { %v1018_v52 = vpop.f32.mrb[23].mxu0  ;;  %v2117_v23 = vpop.f32.mrb[22].mxu1 }
 0x1ad   : > { %v1229_v53 = vpop.f32.mrb[23].mxu1 }
 0x1ae   : > { %1423 = vrot.lane.b32.xlu0 %v2113_v48, %s2380_s28 }
 0x1af   : > { %1355 = vrot.lane.b32.xlu1 %v1002_v47, %s2379_s24 }
 0x1b1   : > { %v2102_v28 = vpop.f32.mrb[24].mxu0 }
 0x1b2   : > { %1419 = vrot.lane.b32.xlu0 %v1213_v49, %s2380_s28  ;;  %v1031_v54 = vpop.f32.mrb[25].mxu0  ;;  %v2120_v55 = vpop.f32.mrb[24].mxu1 }
 0x1b3   : > { %1365 = vrot.lane.b32.xlu1 %v2098_v24, %s2379_s24  ;;  %v2103_v27 = vpop.f32.mrb[26].mxu0  ;;  %v1242_v29 = vpop.f32.mrb[25].mxu1 }
 0x1b4   : > { %v1034_v56 = vpop.f32.mrb[27].mxu0  ;;  %v2121_v30 = vpop.f32.mrb[26].mxu1 }
 0x1b5   : > { %v1245_v57 = vpop.f32.mrb[27].mxu1 }
 0x1b6   : > { %1367 = vrot.lane.b32.xlu0 %v2099_v26, %s2379_s24 }
 0x1b7   : > { %1429 = vrot.lane.b32.xlu1 %v2116_v51, %s2380_s28 }
 0x1b9   : > { %v2106_v32 = vpop.f32.mrb[28].mxu0 }
 0x1ba   : > { %1431 = vrot.lane.b32.xlu0 %v2117_v23, %s2380_s28  ;;  %v1047_v58 = vpop.f32.mrb[29].mxu0  ;;  %v2124_v59 = vpop.f32.mrb[28].mxu1 }
 0x1bb   : > { %1361 = vrot.lane.b32.xlu1 %v1015_v50, %s2379_s24  ;;  %v2107_v31 = vpop.f32.mrb[30].mxu0  ;;  %v1258_v33 = vpop.f32.mrb[29].mxu1 }
 0x1bc   : > { %v1050_v60 = vpop.f32.mrb[31].mxu0  ;;  %v2125_v34 = vpop.f32.mrb[30].mxu1 }
 0x1bd   : > { %v1261_v61 = vpop.f32.mrb[31].mxu1 }
 0x1be   : > { %1363 = vrot.lane.b32.xlu0 %v1018_v52, %s2379_s24 }
 0x1bf   : > { %1425 = vrot.lane.b32.xlu1 %v1226_v25, %s2380_s28 }
 0x1c2   : > { %1427 = vrot.lane.b32.xlu0 %v1229_v53, %s2380_s28 }
 0x1c3   : > { %1373 = vrot.lane.b32.xlu1 %v2102_v28, %s2379_s24 }
 0x1c6   : > { %1375 = vrot.lane.b32.xlu0 %v2103_v27, %s2379_s24 }
 0x1c7   : > { %1437 = vrot.lane.b32.xlu1 %v2120_v55, %s2380_s28 }
 0x1ca   : > { %1439 = vrot.lane.b32.xlu0 %v2121_v30, %s2380_s28 }
 0x1cb   : > { %1369 = vrot.lane.b32.xlu1 %v1031_v54, %s2379_s24 }
 0x1ce   : > { %1371 = vrot.lane.b32.xlu0 %v1034_v56, %s2379_s24 }
 0x1cf   : > { %1433 = vrot.lane.b32.xlu1 %v1242_v29, %s2380_s28 }
 0x1d2   : > { %1435 = vrot.lane.b32.xlu0 %v1245_v57, %s2380_s28 }
 0x1d3   : > { %1381 = vrot.lane.b32.xlu1 %v2106_v32, %s2379_s24 }
 0x1d6   : > { %1379 = vrot.lane.b32.xlu0 %v1050_v60, %s2379_s24 }
 0x1d7   : > { %1377 = vrot.lane.b32.xlu1 %v1047_v58, %s2379_s24 }
 0x1da   : > { %1443 = vrot.lane.b32.xlu0 %v1261_v61, %s2380_s28 }
 0x1db   : > { %1441 = vrot.lane.b32.xlu1 %v1258_v33, %s2380_s28 }
 0x1de   : > { %1383 = vrot.lane.b32.xlu0 %v2107_v31, %s2379_s24 }
 0x1df   : > { %1445 = vrot.lane.b32.xlu1 %v2124_v59, %s2380_s28 }
 0x1e3   : > { %1447 = vrot.lane.b32.xlu1 %v2125_v34, %s2380_s28  ;;  %s2249_s28 = scalar_lea.vmem %s2950_s8, 1024 }
 0x1e4   : > { %p2250_p1 = scmp.ne.s32.totalorder %s2950_s8, %s2249_s28  ;;  %p2257_p5 = scmp.lt.s32.totalorder %s2255_s6, %s2249_s28 }
 0x1e6   : > { %p2251_p2 = pnand %p2250_p1, %p2464_p8  ;;  %p2258_p6 = por %p2257_p5, %p2256_p4 }
 0x1e8   : > { %p2252_p3 = pneg %p2251_p2 }
 0x1ea   : > { %p2259_p7 = pnand %p2258_p6, %p2252_p3 }
 0x1f4   : > { %v1294_v36 = vpop.permute.xlu0 %1293 }
 0x1f7   : > { %v1292_v0 = vpop.permute.xlu1 %1291 }
 0x1f8   : > { %v1290_v63 = vpop.permute.xlu0 %1289 }
 0x1f9   : > { %v1466_v51 = vsel %vm1465_vm2, %v2766_v35, %v1290_v63 }
 0x1fc   : > { %v1296_v1 = vpop.permute.xlu0 %1295 }
 0x1fd   : > { %v1302_v4 = vpop.permute.xlu1 %1301  ;;  %v1469_v49 = vsel %vm1465_vm2, %v2768_v37, %v1296_v1 }
 0x1fe   : > { %v1472_v34 = vsel %vm1465_vm2, %v2774_v2, %v1302_v4 }
 0x200   : > { %v1304_v6 = vpop.permute.xlu0 %1303 }
 0x201   : > { %v2843_v8 = vpop.permute.xlu1 %1297  ;;  %v1473_v61 = vsel %vm1465_vm2, %v2780_v5, %v1304_v6 }
 0x202   : > { %v1470_v2 = vsel %vm1465_vm2, %v2777_v3, %v2843_v8 }
 0x204   : > { %v2845_v9 = vpop.permute.xlu0 %1299 }
 0x205   : > { %v2847_v12 = vpop.permute.xlu1 %1309  ;;  %v1471_v6 = vsel %vm1465_vm2, %v2782_v7, %v2845_v9 }
 0x208   : > { %v2849_v14 = vpop.permute.xlu0 %1311 }
 0x209   : > { %v2851_v16 = vpop.permute.xlu1 %1305 }
 0x20c   : > { %v2853_v17 = vpop.permute.xlu0 %1307 }
 0x20d   : > { %v1318_v20 = vpop.permute.xlu1 %1317 }
 0x20e   : > { %v2857_v22 = vsel %vm1465_vm2, %v2798_v18, %v1318_v20  ;;  %v1468_v18 = vsel %vm1465_vm2, %v2763_v62, %v1294_v36  ;;  %v1467_v62 = vsel %vm1465_vm2, %v2770_v38, %v1292_v0 }
 0x210   : > { %v1320_v40 = vpop.permute.xlu0 %1319 }
 0x211   : > { %v2861_v41 = vsel %vm1465_vm2, %v2804_v21, %v1320_v40  ;;  %v2863_v42 = vpop.permute.xlu1 %1313 }
 0x214   : > { %v2865_v43 = vpop.permute.xlu0 %1315 }
 0x215   : > { %v1358_v44 = vpop.permute.xlu1 %1357 }
 0x216   : > { %v1485_v21 = vsel %vm1482_vm3, %v1468_v18, %v1358_v44 }
 0x218   : > { %v1354_v45 = vpop.permute.xlu0 %1353 }
 0x219   : > { %v1422_v46 = vpop.permute.xlu1 %1421  ;;  %v1483_v52 = vsel %vm1482_vm3, %v1466_v51, %v1354_v45 }
 0x21a   : > { %v1502_v26 = vsel %vm1499_vm4, %v1485_v21, %v1422_v46 }
 0x21b   : > { %v1539_v57 = vmul.f32 %v1502_v26, %v1502_v26 }
 0x21c   : > { %v1360_v47 = vpop.permute.xlu0 %1359 }
 0x21d   : > { %v1418_v48 = vpop.permute.xlu1 %1417  ;;  %v1486_v24 = vsel %vm1482_vm3, %v1469_v49, %v1360_v47 }
 0x21e   : > { %v1500_v37 = vsel %vm1499_vm4, %v1483_v52, %v1418_v48 }
 0x21f   : > { %v1537_v55 = vmul.f32 %v1500_v37, %v1500_v37 }
 0x220   : > { %v1424_v50 = vpop.permute.xlu0 %1423 }
 0x221   : > { %v1503_v25 = vsel %vm1499_vm4, %v1486_v24, %v1424_v50  ;;  %v1356_v53 = vpop.permute.xlu1 %1355 }
 0x222   : > { %v1979_v23 = vpack.c.bf16 %v1503_v25, %v1502_v26  ;;  %v1484_v35 = vsel %vm1482_vm3, %v1467_v62, %v1356_v53  ;;  %v1540_v59 = vmul.f32 %v1503_v25, %v1503_v25 }
 0x224   : > { %2011 = vst [vmem:[%s2882_s30 + $0x8] sm:$0xff] %v1979_v23   ;;  %v1420_v28 = vpop.permute.xlu0 %1419 }
 0x225   : > { %v1501_v54 = vsel %vm1499_vm4, %v1484_v35, %v1420_v28  ;;  %v1366_v30 = vpop.permute.xlu1 %1365  ;;  %v1476_v35 = vsel %vm1465_vm2, %v2786_v10, %v2847_v12  ;;  %v1477_v28 = vsel %vm1465_vm2, %v2792_v13, %v2849_v14  ;;  %v1474_v10 = vsel %vm1465_vm2, %v2789_v11, %v2851_v16 }
 0x226   : > { %v1516_v27 = vadd.f32 %v1501_v54, %v1500_v37  ;;  %v1538_v29 = vmul.f32 %v1501_v54, %v1501_v54  ;;  %v1974_v56 = vpack.c.bf16 %v1501_v54, %v1500_v37  ;;  %v1489_v36 = vsel %vm1482_vm3, %v1472_v34, %v1366_v30 }
 0x227   : > { %v1475_v14 = vsel %vm1465_vm2, %v2794_v15, %v2853_v17 }
 0x228   : > { %v1517_v32 = vadd.f32 %v1516_v27, %v1502_v26  ;;  %v1553_v38 = vadd.f32 %v1538_v29, %v1537_v55  ;;  %1975 = vst [vmem:[%s2882_s30] sm:$0xff] %v1974_v56   ;;  %v1368_v58 = vpop.permute.xlu0 %1367 }
 0x229   : > { %v1430_v33 = vpop.permute.xlu1 %1429  ;;  %v1490_v63 = vsel %vm1482_vm3, %v1473_v61, %v1368_v58 }
 0x22a   : > { %v1554_v31 = vadd.f32 %v1553_v38, %v1539_v57  ;;  %v1518_v60 = vadd.f32 %v1517_v32, %v1503_v25  ;;  %v1506_v20 = vsel %vm1499_vm4, %v1489_v36, %v1430_v33 }
 0x22b   : > { %v1543_v25 = vmul.f32 %v1506_v20, %v1506_v20 }
 0x22c   : > { %v1432_v0 = vpop.permute.xlu0 %1431  ;;  %v1555_v1 = vadd.f32 %v1554_v31, %v1540_v59 }
 0x22d   : > { %v1507_v40 = vsel %vm1499_vm4, %v1490_v63, %v1432_v0  ;;  %v1362_v45 = vpop.permute.xlu1 %1361 }
 0x22e   : > { %v1989_v44 = vpack.c.bf16 %v1507_v40, %v1506_v20  ;;  %v1487_v5 = vsel %vm1482_vm3, %v1470_v2, %v1362_v45  ;;  %v1544_v9 = vmul.f32 %v1507_v40, %v1507_v40 }
 0x230   : > { %2013 = vst [vmem:[%s2882_s30 + $0x18] sm:$0xff] %v1989_v44   ;;  %v1364_v46 = vpop.permute.xlu0 %1363 }
 0x231   : > { %v1426_v4 = vpop.permute.xlu1 %1425  ;;  %v1488_v48 = vsel %vm1482_vm3, %v1471_v6, %v1364_v46  ;;  %v1479_v46 = vsel %vm1465_vm2, %v2806_v39, %v2865_v43  ;;  %v1478_v6 = vsel %vm1465_vm2, %v2801_v19, %v2863_v42 }
 0x232   : > { %v1504_v47 = vsel %vm1499_vm4, %v1487_v5, %v1426_v4 }
 0x233   : > { %v1519_v18 = vadd.f32 %v1518_v60, %v1504_v47  ;;  %v1541_v49 = vmul.f32 %v1504_v47, %v1504_v47 }
 0x234   : > { %v1428_v21 = vpop.permute.xlu0 %1427 }
 0x235   : > { %v1505_v24 = vsel %vm1499_vm4, %v1488_v48, %v1428_v21  ;;  %v1556_v50 = vadd.f32 %v1555_v1, %v1541_v49  ;;  %v1374_v26 = vpop.permute.xlu1 %1373 }
 0x236   : > { %v1520_v51 = vadd.f32 %v1519_v18, %v1505_v24  ;;  %v1542_v3 = vmul.f32 %v1505_v24, %v1505_v24  ;;  %v1984_v8 = vpack.c.bf16 %v1505_v24, %v1504_v47  ;;  %v1493_v54 = vsel %vm1482_vm3, %v1476_v35, %v1374_v26 }
 0x238   : > { %v1521_v52 = vadd.f32 %v1520_v51, %v1506_v20  ;;  %v1557_v23 = vadd.f32 %v1556_v50, %v1542_v3  ;;  %2012 = vst [vmem:[%s2882_s30 + $0x10] sm:$0xff] %v1984_v8   ;;  %v1376_v7 = vpop.permute.xlu0 %1375 }
 0x239   : > { %v1438_v62 = vpop.permute.xlu1 %1437  ;;  %v1494_v55 = vsel %vm1482_vm3, %v1477_v28, %v1376_v7 }
 0x23a   : > { %v1558_v53 = vadd.f32 %v1557_v23, %v1543_v25  ;;  %v1522_v37 = vadd.f32 %v1521_v52, %v1507_v40  ;;  %v1510_v56 = vsel %vm1499_vm4, %v1493_v54, %v1438_v62 }
 0x23b   : > { %v1547_v0 = vmul.f32 %v1510_v56, %v1510_v56 }
 0x23c   : > { %v1440_v27 = vpop.permute.xlu0 %1439  ;;  %v1559_v29 = vadd.f32 %v1558_v53, %v1544_v9 }
 0x23d   : > { %v1511_v30 = vsel %vm1499_vm4, %v1494_v55, %v1440_v27  ;;  %v1370_v32 = vpop.permute.xlu1 %1369 }
 0x23e   : > { %v1999_v57 = vpack.c.bf16 %v1511_v30, %v1510_v56  ;;  %v1491_v13 = vsel %vm1482_vm3, %v1474_v10, %v1370_v32  ;;  %v1548_v17 = vmul.f32 %v1511_v30, %v1511_v30 }
 0x240   : > { %2015 = vst [vmem:[%s2882_s30 + $0x28] sm:$0xff] %v1999_v57   ;;  %v1372_v38 = vpop.permute.xlu0 %1371 }
 0x241   : > { %v1434_v12 = vpop.permute.xlu1 %1433  ;;  %v1492_v59 = vsel %vm1482_vm3, %v1475_v14, %v1372_v38 }
 0x242   : > { %v1508_v58 = vsel %vm1499_vm4, %v1491_v13, %v1434_v12 }
 0x243   : > { %v1523_v31 = vadd.f32 %v1522_v37, %v1508_v58  ;;  %v1545_v33 = vmul.f32 %v1508_v58, %v1508_v58 }
 0x244   : > { %v1436_v60 = vpop.permute.xlu0 %1435 }
 0x245   : > { %v1509_v34 = vsel %vm1499_vm4, %v1492_v59, %v1436_v60  ;;  %v1560_v61 = vadd.f32 %v1559_v29, %v1545_v33  ;;  %v1382_v63 = vpop.permute.xlu1 %1381 }
 0x246   : > { %v1524_v36 = vadd.f32 %v1523_v31, %v1509_v34  ;;  %v1546_v11 = vmul.f32 %v1509_v34, %v1509_v34  ;;  %v1994_v16 = vpack.c.bf16 %v1509_v34, %v1508_v58  ;;  %v1497_v24 = vsel %vm1482_vm3, %v2857_v22, %v1382_v63 }
 0x248   : > { %v1525_v1 = vadd.f32 %v1524_v36, %v1510_v56  ;;  %v1561_v20 = vadd.f32 %v1560_v61, %v1546_v11  ;;  %2014 = vst [vmem:[%s2882_s30 + $0x20] sm:$0xff] %v1994_v16   ;;  %v1380_v15 = vpop.permute.xlu0 %1379 }
 0x249   : > { %v1378_v44 = vpop.permute.xlu1 %1377  ;;  %v1496_v2 = vsel %vm1482_vm3, %v1479_v46, %v1380_v15 }
 0x24a   : > { %v1562_v40 = vadd.f32 %v1561_v20, %v1547_v0  ;;  %v1526_v45 = vadd.f32 %v1525_v1, %v1511_v30  ;;  %v1495_v48 = vsel %vm1482_vm3, %v1478_v6, %v1378_v44 }
 0x24c   : > { %v1444_v5 = vpop.permute.xlu0 %1443  ;;  %v1563_v4 = vadd.f32 %v1562_v40, %v1548_v17 }
 0x24d   : > { %v1513_v47 = vsel %vm1499_vm4, %v1496_v2, %v1444_v5  ;;  %v1442_v18 = vpop.permute.xlu1 %1441 }
 0x24e   : > { %v1512_v49 = vsel %vm1499_vm4, %v1495_v48, %v1442_v18  ;;  %v1550_v50 = vmul.f32 %v1513_v47, %v1513_v47 }
 0x24f   : > { %v1527_v39 = vadd.f32 %v1526_v45, %v1512_v49  ;;  %v1549_v43 = vmul.f32 %v1512_v49, %v1512_v49  ;;  %v2004_v21 = vpack.c.bf16 %v1513_v47, %v1512_v49 }
 0x250   : > { %v1384_v3 = vpop.permute.xlu0 %1383 }
 0x251   : > { %v1564_v51 = vadd.f32 %v1563_v4, %v1549_v43  ;;  %2016 = vst [vmem:[%s2882_s30 + $0x30] sm:$0xff] %v2004_v21   ;;  %v1446_v19 = vpop.permute.xlu1 %1445  ;;  %v1528_v42 = vadd.f32 %v1527_v39, %v1513_v47  ;;  %v1498_v22 = vsel %vm1482_vm3, %v2861_v41, %v1384_v3 }
 0x252   : > { %v1514_v8 = vsel %vm1499_vm4, %v1497_v24, %v1446_v19 }
 0x253   : > { %v1529_v26 = vadd.f32 %v1528_v42, %v1514_v8  ;;  %v1551_v25 = vmul.f32 %v1514_v8, %v1514_v8  ;;  %v1565_v52 = vadd.f32 %v1564_v51, %v1550_v50 }
 0x255   : > { %v1566_v23 = vadd.f32 %v1565_v52, %v1551_v25  ;;  %v1448_v7 = vpop.permute.xlu1 %1447 }
 0x256   : > { %v1515_v9 = vsel %vm1499_vm4, %v1498_v22, %v1448_v7 }
 0x257   : > { %v1530_v53 = vadd.f32 %v1529_v26, %v1515_v9  ;;  %v1552_v62 = vmul.f32 %v1515_v9, %v1515_v9  ;;  %v2009_v37 = vpack.c.bf16 %v1515_v9, %v1514_v8 }
 0x259   : > { %v1531_v35 = vrot.slane %v1530_v53, 4  ;;  %v1567_v28 = vadd.f32 %v1566_v23, %v1552_v62  ;;  %2017 = vst [vmem:[%s2882_s30 + $0x38] sm:$0xff] %v2009_v37  }
 0x25a   : > { %2262 = shalt.err (!%p2259_p7)
}
 0x25b   : > { %s2263_s30 = scalar_lea.hbm %s2955_s20, 1024  ;;  %s2267_s10 = scalar_lea.hbm %s3046_s2, 4096 }
 0x25c   : > { %p2264_p10 = scmp.ne.s32.totalorder %s2955_s20, %s2263_s30  ;;  %p2268_p13 = scmp.lt.u32.totalorder %s2955_s20, %s3046_s2 }
 0x25d   : > { %p2269_p0 = scmp.lt.u32.totalorder %s2267_s10, %s2263_s30  ;;  %p2271_p2 = scmp.lt.u32.totalorder %s2263_s30, %s2955_s20 }
 0x25e   : > { %p2265_p11 = pnand %p2264_p10, %p2464_p8 }
 0x25f   : > { %p2270_p1 = por %p2269_p0, %p2268_p13 }
 0x260   : > { %p2266_p12 = pneg %p2265_p11 }
 0x261   : > { %p2272_p3 = por %p2271_p2, %p2270_p1 }
 0x263   : > { %p2273_p4 = pnand %p2272_p3, %p2266_p12 }
 0x265   : > { %2276 = shalt.err (!%p2273_p4)
}
 0x266   : > { %s2382_s28 = smov 4   ;;  %v1532_v41 = vadd.f32 %v1531_v35, %v1530_v53  ;;  %v1568_v54 = vrot.slane %v1567_v28, 4  ;;  %s1819_s5 = sshll.u32 %s2534_s25, 1  ;;  %vm1574_vm5 = vcmask 1040384  }
 0x267   : > { %2130 = dma.vmem_to_hbm [thread:$0]  (%p2464_p8), %s2950_s8, 1024, %s2955_s20, %s1658_s21, %s2379_s24, %s2379_s24, %s2382_s28  }
 0x268   : > { %v1533_v55 = vrot.slane %v1532_v41, 2  ;;  %v1569_v27 = vadd.f32 %v1568_v54, %v1567_v28  ;;  %s1951_s6 = sshll.u32 %s2363_s16, 1  ;;  %s397_s9 = scalar_lea.vmem [#allocation5], %s1819_s5 }
 0x269   : > { %s1692_s30 = sadd.s32 %s2359_s15, %s1951_s6  ;;  %s1696_s10 = sshll.u32 %s397_s9, 4  ;;  %s2992_s10 = int_to_ptr.vmem [resolvable:$true] %s1696_s10 }
 0x26a   : > { %v1534_v29 = vadd.f32 %v1533_v55, %v1532_v41  ;;  %v1570_v56 = vrot.slane %v1569_v27, 2  ;;  %s1952_s7 = sshll.u32 %s1692_s30, 5  ;;  %s1663_s15 = scalar_lea.sflag [#allocation6], %s2534_s25 }
 0x26b   : > { %s2990_s20 = scalar_lea.hbm %s3047_s3, %s1952_s7  ;;  %s2277_s16 = scalar_lea.vmem %s2992_s10, 32 }
 0x26c   : > { %v1535_v30 = vrot.slane %v1534_v29, 1  ;;  %v1571_v57 = vadd.f32 %v1570_v56, %v1569_v27  ;;  %p2278_p5 = scmp.ne.s32.totalorder %s2992_s10, %s2277_s16  ;;  %s2383_s21 = smov [#allocation5]  }
 0x26d   : > { %s2281_s11 = sshll.u32 %s2383_s21, 4  ;;  %s2282_s11 = int_to_ptr.vmem [resolvable:$false] %s2281_s11 }
 0x26e   : > { %v1572_v32 = vrot.slane %v1571_v57, 1  ;;  %v1536_v38 = vadd.f32 %v1535_v30, %v1534_v29  ;;  %p2279_p6 = pnand %p2278_p5, %p2464_p8  ;;  %s2283_s29 = scalar_lea.vmem %s2282_s11, 64 }
 0x26f   : > { %p2284_p10 = scmp.lt.s32.totalorder %s2992_s10, %s2282_s11  ;;  %p2285_p11 = scmp.lt.s32.totalorder %s2283_s29, %s2277_s16 }
 0x270   : > { %v1573_v10 = vadd.f32 %v1572_v32, %v1571_v57  ;;  %p2280_p7 = pneg %p2279_p6 }
 0x271   : > { %p2286_p12 = por %p2285_p11, %p2284_p10 }
 0x272   : > { %v1575_v13 = vsel %vm1574_vm5, %v1536_v38, %v1573_v10 }
 0x273   : > { %1576 = vst [vmem:[%s397_s9] sm:$0x3] %v1575_v13  ;;  %p2287_p13 = pnand %p2286_p12, %p2280_p7 }
 0x275   : > { %2290 = shalt.err (!%p2287_p13)
}
 0x276   : > { %s2291_s25 = scalar_lea.hbm %s2990_s20, 32  ;;  %s2295_s6 = scalar_lea.hbm %s3047_s3, 128 }
 0x277   : > { %p2292_p0 = scmp.ne.s32.totalorder %s2990_s20, %s2291_s25  ;;  %p2296_p3 = scmp.lt.u32.totalorder %s2990_s20, %s3047_s3 }
 0x278   : > { %p2297_p4 = scmp.lt.u32.totalorder %s2295_s6, %s2291_s25  ;;  %p2299_p6 = scmp.lt.u32.totalorder %s2291_s25, %s2990_s20 }
 0x279   : > { %p2293_p1 = pnand %p2292_p0, %p2464_p8 }
 0x27a   : > { %p2298_p5 = por %p2297_p4, %p2296_p3 }
 0x27b   : > { %p2294_p2 = pneg %p2293_p1 }
 0x27c   : > { %p2300_p7 = por %p2299_p6, %p2298_p5 }
 0x27e   : > { %p2301_p10 = pnand %p2300_p7, %p2294_p2 }
 0x280   : > { %2304 = shalt.err (!%p2301_p10)
}
 0x281   : > { %2131 = dma.vmem_to_hbm [thread:$0]  (%p2464_p8), %s2992_s10, 32, %s2990_s20, %s1663_s15  }
 0x282 PF: > { %p2141_p11 = scmp.ge.s32.totalorder %s2375_s19, 2  ;;  %s1708_s9 = sand.u32 1, %s2347_s12  }
 0x283   : > { %s1709_s24 = scalar_lea.sflag [#allocation4], %s1708_s9 }
 0x284   : > { %p2135_p12 = pnand %p2141_p11, %p2468_p9 }
 0x286   : > { %2338 = dma.done.wait (!%p2135_p12), %s1709_s24, 1024  }
 0x287   : > { %2340 = vsyncadd (!%p2135_p12), %s1709_s24, 4294966272  ;;  %s1718_s8 = scalar_lea.sflag [#allocation6], %s1708_s9 }
 0x288   : > { %2342 = dma.done.wait (!%p2135_p12), %s1718_s8, 32  }
 0x289   : > { %2344 = vsyncadd (!%p2135_p12), %s1718_s8, 4294967264  ;;  %s20_s19 = sadd.s32 1, %s2375_s19   ;;  %s3051_s12 = smov %s2351_s13 }
 0x28a   : > { %p17_p13 = scmp.ge.s32.totalorder %s20_s19, 6   ;;  %s3052_s13 = smov %s2355_s14 }
 0x28b   : > { %s3053_s14 = smov %s2476_s4  ;;  %s3054_s15 = smov %s2367_s17 }
 0x28c   : > { %s3055_s16 = smov %s2371_s18  ;;  %s3056_s17 = smov %s3059_s22 }
 0x28d   : > { %s3057_s18 = smov %s3063_s23  ;;  %19 = sbr.rel (!%p17_p13) target bundleno = 7 (0x7), region = 130 }
 0x294   :  { %1723 = vsyncpa [#allocation4], 1 }
 0x295   :  { %1725 = vsyncpa [#allocation4 + $0x1], 1 }
 0x296   :  { %1726 = vsyncpa [#allocation6], 1 }
 0x297   :  { %1728 = vsyncpa [#allocation6 + $0x1], 1 }

</bundles_post_ra>
